<compile_context>
chip_gen: v7x
topology: tpu7x:2x2x1
jax: 0.10.0
libtpu: 0.0.40
codegen_flags: <defaults>
</compile_context>

<pallas_src>
import functools

import jax
import jax.numpy as jnp
from jax.experimental import pallas as pl
from jax.experimental.pallas import tpu as pltpu

NEG_INF = -1e30  # logit value for padded action lanes -> exp() underflows to 0


def _round_up(x, m):
    return ((x + m - 1) // m) * m


def actor_kernel(s_ref, w1_ref, b1_ref, w2_ref, b2_ref, w3_ref, b3_ref, out_ref,
                 *, use_tanh, act_dtype):
    mxu = w1_ref.dtype  # bf16 weights -> bf16 MXU operands, f32 accumulation
    act = jnp.tanh if use_tanh else (lambda x: jnp.maximum(x, 0.0))

    x = s_ref[...]  # already bf16 (cast in the wrapper)
    z1 = jnp.dot(x, w1_ref[...], preferred_element_type=jnp.float32) + b1_ref[...]
    h1 = act(z1.astype(act_dtype)).astype(mxu)
    z2 = jnp.dot(h1, w2_ref[...], preferred_element_type=jnp.float32) + b2_ref[...]
    h2 = act(z2.astype(act_dtype)).astype(mxu)
    logits = (
        jnp.dot(h2, w3_ref[...], preferred_element_type=jnp.float32) + b3_ref[...]
    )

    # softmax over dim=1 (action dim; padded lanes carry -1e30 bias -> exp == 0)
    m = jnp.max(logits, axis=1, keepdims=True)
    e = jnp.exp(logits - m)
    d = jnp.sum(e, axis=1, keepdims=True)
    r = pl.reciprocal(d, approx=True)   # EUP vrcp (free slot)
    r = r * (2.0 - d * r)               # one Newton step -> ~f32-exact, sum(prob)~1
    out_ref[...] = (e * r).astype(out_ref.dtype)


@functools.partial(jax.jit, static_argnames=("block_b", "use_tanh", "bf16_act"))
def actor_forward(s, w1, b1, w2, b2, w3, b3, *,
                  block_b=None, use_tanh=True, bf16_act=False):
    batch, state_dim = s.shape
    hidden = w1.shape[1]
    action_dim = w3.shape[1]
    w_dt = w1.dtype

    # --- pad hidden width to a multiple of 128 lanes (exact: zero pads everywhere) ---
    h_pad = _round_up(hidden, 128)
    if h_pad != hidden:
        w1 = jnp.zeros((state_dim, h_pad), w_dt).at[:, :hidden].set(w1)
        b1 = jnp.zeros((1, h_pad), jnp.float32).at[:, :hidden].set(b1.astype(jnp.float32))
        w2 = jnp.zeros((h_pad, h_pad), w_dt).at[:hidden, :hidden].set(w2)
        b2 = jnp.zeros((1, h_pad), jnp.float32).at[:, :hidden].set(b2.astype(jnp.float32))
        w3 = jnp.zeros((h_pad, action_dim), w_dt).at[:hidden, :].set(w3)
    else:
        b1 = b1.astype(jnp.float32)
        b2 = b2.astype(jnp.float32)

    # --- lane-dense output: pad action dim to a multiple of 128 lanes ---
    a_pad = _round_up(action_dim, 128)
    w3p = jnp.zeros((h_pad, a_pad), w_dt).at[:, :action_dim].set(w3)
    b3p = jnp.full((1, a_pad), NEG_INF, jnp.float32).at[:, :action_dim].set(
        b3.astype(jnp.float32))

    # --- batch tiling: default = exactly 2 big tiles (1 per TC on v7x), cap 1024 rows ---
    if block_b is None:
        if batch <= 2048:
            block_b = max(8, _round_up(pl.cdiv(batch, 2), 8))
        else:
            block_b = 1024
    n_blocks = pl.cdiv(batch, block_b)
    b_pad = n_blocks * block_b

    # bf16 input: halves input DMA; reference also feeds bf16 to the first matmul.
    s = s.astype(jnp.bfloat16)
    if b_pad != batch:
        s = jnp.pad(s, ((0, b_pad - batch), (0, 0)))

    act_dtype = jnp.bfloat16 if bf16_act else jnp.float32

    flops = 2 * b_pad * (state_dim * h_pad + h_pad * h_pad + h_pad * a_pad)
    transcendentals = b_pad * ((2 * h_pad if use_tanh else 0) + a_pad)  # tanh + exp
    bytes_accessed = (
        b_pad * state_dim * 2                                   # s (bf16)
        + (state_dim * h_pad + h_pad * h_pad + h_pad * a_pad) * 2  # weights (bf16)
        + (2 * h_pad + a_pad) * 4                               # biases (f32)
        + b_pad * a_pad * 4                                     # output (f32)
    )

    out = pl.pallas_call(
        functools.partial(actor_kernel, use_tanh=use_tanh, act_dtype=act_dtype),
        out_shape=jax.ShapeDtypeStruct((b_pad, a_pad), jnp.float32),
        grid=(n_blocks,),
        in_specs=[
            pl.BlockSpec((block_b, state_dim), lambda i: (i, 0)),  # s: tiled over batch
            pl.BlockSpec((state_dim, h_pad), lambda i: (0, 0)),    # w1: resident
            pl.BlockSpec((1, h_pad), lambda i: (0, 0)),            # b1: resident
            pl.BlockSpec((h_pad, h_pad), lambda i: (0, 0)),        # w2: resident
            pl.BlockSpec((1, h_pad), lambda i: (0, 0)),            # b2: resident
            pl.BlockSpec((h_pad, a_pad), lambda i: (0, 0)),        # w3 (padded): resident
            pl.BlockSpec((1, a_pad), lambda i: (0, 0)),            # b3 (padded): resident
        ],
        out_specs=pl.BlockSpec((block_b, a_pad), lambda i: (i, 0)),
        compiler_params=pltpu.CompilerParams(
            dimension_semantics=("parallel",),  # batch axis -> both TCs on v7x
        ),
        cost_estimate=pl.CostEstimate(
            flops=flops,
            transcendentals=transcendentals,
            bytes_accessed=bytes_accessed,
        ),
    )(s, w1, b1, w2, b2, w3p, b3p)

    return out[:batch, :action_dim]


def orthogonal_weight(key, out_dim, in_dim, gain=1.0):
    """Deterministic orthogonal init (PyTorch-style); returns (in_dim, out_dim) bf16."""
    a = jax.random.normal(key, (max(out_dim, in_dim), min(out_dim, in_dim)),
                          dtype=jnp.float32)
    q, r = jnp.linalg.qr(a)
    q = q * jnp.sign(jnp.diagonal(r))[None, :]
    w = q if out_dim >= in_dim else q.T  # (out_dim, in_dim)
    w = w[:out_dim, :in_dim]
    return (gain * w).T.astype(jnp.bfloat16)  # stored (in, out), bf16 for the MXU


def init_params(state_dim, hidden_width, action_dim, seed=0):
    k1, k2, k3 = jax.random.split(jax.random.PRNGKey(seed), 3)
    w1 = orthogonal_weight(k1, hidden_width, state_dim, gain=1.0)
    b1 = jnp.zeros((1, hidden_width), jnp.float32)
    w2 = orthogonal_weight(k2, hidden_width, hidden_width, gain=1.0)
    b2 = jnp.zeros((1, hidden_width), jnp.float32)
    w3 = orthogonal_weight(k3, action_dim, hidden_width, gain=0.01)
    b3 = jnp.zeros((1, action_dim), jnp.float32)
    return w1, b1, w2, b2, w3, b3


def reference_forward(s, w1, b1, w2, b2, w3, b3, use_tanh=True):
    act = jnp.tanh if use_tanh else jax.nn.relu
    cd = w1.dtype  # match kernel: bf16 MXU operands, f32 accumulation
    h1 = act(jnp.dot(s.astype(cd), w1, preferred_element_type=jnp.float32) + b1)
    h2 = act(jnp.dot(h1.astype(cd), w2, preferred_element_type=jnp.float32) + b2)
    logits = jnp.dot(h2.astype(cd), w3, preferred_element_type=jnp.float32) + b3
    return jax.nn.softmax(logits, axis=1)


if __name__ == "__main__":
    # Batched actor evaluation (batch of environment states). Batch intentionally not
    # a multiple of 8 to exercise the padding path; auto tile -> 2 grid steps of 152.
    batch, state_dim, hidden_width, action_dim = 300, 16, 64, 8

    key = jax.random.PRNGKey(0)
    s = jax.random.normal(key, (batch, state_dim), dtype=jnp.float32)
    params = init_params(state_dim, hidden_width, action_dim, seed=0)

    # bf16_act=True is a v6e/v7x-only knob (bf16 EUP tanh); keep f32 here for exact
    # agreement with the f32-tanh reference and v5e portability.
    a_prob = actor_forward(s, *params, use_tanh=True, bf16_act=False)
    a_prob = jax.block_until_ready(a_prob)

    ref = reference_forward(s, *params, use_tanh=True)
    assert a_prob.shape == (batch, action_dim)
    assert bool(jnp.all(jnp.isfinite(a_prob)))
    assert jnp.allclose(jnp.sum(a_prob, axis=1), 1.0, atol=1e-5)
    assert jnp.allclose(a_prob, ref, atol=1e-4, rtol=1e-4)

    print("KERNEL_OK")
</pallas_src>

<mosaic_0001>
module attributes {stable_mosaic.version = 11 : i64} {
  func.func @actor_kernel(%arg0: i32, %arg1: memref<152x16xbf16, #tpu.memory_space<vmem>>, %arg2: memref<16x128xbf16, #tpu.memory_space<vmem>>, %arg3: memref<1x128xf32, #tpu.memory_space<vmem>>, %arg4: memref<128x128xbf16, #tpu.memory_space<vmem>>, %arg5: memref<1x128xf32, #tpu.memory_space<vmem>>, %arg6: memref<128x128xbf16, #tpu.memory_space<vmem>>, %arg7: memref<1x128xf32, #tpu.memory_space<vmem>>, %arg8: memref<152x128xf32, #tpu.memory_space<vmem>>) attributes {dimension_semantics = [#tpu.dimension_semantics<parallel>], iteration_bounds = array<i64: 2>, scalar_prefetch = 0 : i64, scratch_operands = 0 : i64, tpu.core_type = #tpu.core_type<tc>, window_params = [{transform_indices = @transform_0, window_bounds = array<i64: 152, 16>}, {pipeline_mode = #tpu.pipeline_mode<synchronous>, transform_indices = @transform_1, window_bounds = array<i64: 16, 128>}, {pipeline_mode = #tpu.pipeline_mode<synchronous>, transform_indices = @transform_2, window_bounds = array<i64: 1, 128>}, {pipeline_mode = #tpu.pipeline_mode<synchronous>, transform_indices = @transform_3, window_bounds = array<i64: 128, 128>}, {pipeline_mode = #tpu.pipeline_mode<synchronous>, transform_indices = @transform_4, window_bounds = array<i64: 1, 128>}, {pipeline_mode = #tpu.pipeline_mode<synchronous>, transform_indices = @transform_5, window_bounds = array<i64: 128, 128>}, {pipeline_mode = #tpu.pipeline_mode<synchronous>, transform_indices = @transform_6, window_bounds = array<i64: 1, 128>}, {transform_indices = @transform_7, window_bounds = array<i64: 152, 128>}]} {
    %c0 = arith.constant 0 : index
    %c0_0 = arith.constant 0 : index
    %0 = vector.load %arg1[%c0, %c0_0] : memref<152x16xbf16, #tpu.memory_space<vmem>>, vector<152x16xbf16>
    %c0_1 = arith.constant 0 : index
    %c0_2 = arith.constant 0 : index
    %1 = vector.load %arg2[%c0_1, %c0_2] : memref<16x128xbf16, #tpu.memory_space<vmem>>, vector<16x128xbf16>
    %cst = arith.constant dense<0.000000e+00> : vector<152x128xf32>
    %2 = tpu.matmul %0, %1, %cst {dimension_numbers = #tpu.dot_dimension_numbers<[1], [0], [0], [1], [0, 0, 1, 1], [], []>} : vector<152x16xbf16>, vector<16x128xbf16>, vector<152x128xf32> -> vector<152x128xf32>
    %c0_3 = arith.constant 0 : index
    %c0_4 = arith.constant 0 : index
    %3 = vector.load %arg3[%c0_3, %c0_4] : memref<1x128xf32, #tpu.memory_space<vmem>>, vector<1x128xf32>
    %4 = vector.broadcast %3 : vector<1x128xf32> to vector<152x128xf32>
    %5 = arith.addf %2, %4 : vector<152x128xf32>
    %6 = math.tanh %5 : vector<152x128xf32>
    %7 = arith.truncf %6 : vector<152x128xf32> to vector<152x128xbf16>
    %c0_5 = arith.constant 0 : index
    %c0_6 = arith.constant 0 : index
    %8 = vector.load %arg4[%c0_5, %c0_6] : memref<128x128xbf16, #tpu.memory_space<vmem>>, vector<128x128xbf16>
    %cst_7 = arith.constant dense<0.000000e+00> : vector<152x128xf32>
    %9 = tpu.matmul %7, %8, %cst_7 {dimension_numbers = #tpu.dot_dimension_numbers<[1], [0], [0], [1], [0, 0, 1, 1], [], []>} : vector<152x128xbf16>, vector<128x128xbf16>, vector<152x128xf32> -> vector<152x128xf32>
    %c0_8 = arith.constant 0 : index
    %c0_9 = arith.constant 0 : index
    %10 = vector.load %arg5[%c0_8, %c0_9] : memref<1x128xf32, #tpu.memory_space<vmem>>, vector<1x128xf32>
    %11 = vector.broadcast %10 : vector<1x128xf32> to vector<152x128xf32>
    %12 = arith.addf %9, %11 : vector<152x128xf32>
    %13 = math.tanh %12 : vector<152x128xf32>
    %14 = arith.truncf %13 : vector<152x128xf32> to vector<152x128xbf16>
    %c0_10 = arith.constant 0 : index
    %c0_11 = arith.constant 0 : index
    %15 = vector.load %arg6[%c0_10, %c0_11] : memref<128x128xbf16, #tpu.memory_space<vmem>>, vector<128x128xbf16>
    %cst_12 = arith.constant dense<0.000000e+00> : vector<152x128xf32>
    %16 = tpu.matmul %14, %15, %cst_12 {dimension_numbers = #tpu.dot_dimension_numbers<[1], [0], [0], [1], [0, 0, 1, 1], [], []>} : vector<152x128xbf16>, vector<128x128xbf16>, vector<152x128xf32> -> vector<152x128xf32>
    %c0_13 = arith.constant 0 : index
    %c0_14 = arith.constant 0 : index
    %17 = vector.load %arg7[%c0_13, %c0_14] : memref<1x128xf32, #tpu.memory_space<vmem>>, vector<1x128xf32>
    %18 = vector.broadcast %17 : vector<1x128xf32> to vector<152x128xf32>
    %19 = arith.addf %16, %18 : vector<152x128xf32>
    %cst_15 = arith.constant dense<0xFF800000> : vector<152xf32>
    %20 = vector.multi_reduction <maximumf>, %19, %cst_15 [1] : vector<152x128xf32> to vector<152xf32>
    %21 = vector.shape_cast %20 : vector<152xf32> to vector<152x1xf32>
    %22 = vector.broadcast %21 : vector<152x1xf32> to vector<152x128xf32>
    %23 = arith.subf %19, %22 : vector<152x128xf32>
    %24 = math.exp %23 : vector<152x128xf32>
    %cst_16 = arith.constant dense<0.000000e+00> : vector<152xf32>
    %25 = vector.multi_reduction <add>, %24, %cst_16 [1] : vector<152x128xf32> to vector<152xf32>
    %26 = vector.shape_cast %25 : vector<152xf32> to vector<152x1xf32>
    %27 = tpu.reciprocal %26 {approx = true} : vector<152x1xf32> -> vector<152x1xf32>
    %28 = arith.mulf %26, %27 : vector<152x1xf32>
    %cst_17 = arith.constant 2.000000e+00 : f32
    %29 = vector.broadcast %cst_17 : f32 to vector<152x1xf32>
    %30 = arith.subf %29, %28 : vector<152x1xf32>
    %31 = arith.mulf %27, %30 : vector<152x1xf32>
    %32 = vector.broadcast %31 : vector<152x1xf32> to vector<152x128xf32>
    %33 = arith.mulf %24, %32 : vector<152x128xf32>
    %c0_18 = arith.constant 0 : index
    %c0_19 = arith.constant 0 : index
    %34 = vector.load %arg8[%c0_18, %c0_19] : memref<152x128xf32, #tpu.memory_space<vmem>>, vector<152x128xf32>
    tpu.vector_store %arg8[%c0_18, %c0_19], %33 {strides = array<i32>} : memref<152x128xf32, #tpu.memory_space<vmem>>, vector<152x128xf32>,
    return
  }
  func.func @transform_0(%arg0: i32) -> (i32, i32) {
    %c0_i32 = arith.constant 0 : i32
    %c0_i32_0 = arith.constant 0 : i32
    return %arg0, %c0_i32 : i32, i32
  }
  func.func @transform_1(%arg0: i32) -> (i32, i32) {
    %c0_i32 = arith.constant 0 : i32
    %c0_i32_0 = arith.constant 0 : i32
    %c0_i32_1 = arith.constant 0 : i32
    return %c0_i32, %c0_i32_0 : i32, i32
  }
  func.func @transform_2(%arg0: i32) -> (i32, i32) {
    %c0_i32 = arith.constant 0 : i32
    %c0_i32_0 = arith.constant 0 : i32
    %c0_i32_1 = arith.constant 0 : i32
    return %c0_i32, %c0_i32_0 : i32, i32
  }
  func.func @transform_3(%arg0: i32) -> (i32, i32) {
    %c0_i32 = arith.constant 0 : i32
    %c0_i32_0 = arith.constant 0 : i32
    %c0_i32_1 = arith.constant 0 : i32
    return %c0_i32, %c0_i32_0 : i32, i32
  }
  func.func @transform_4(%arg0: i32) -> (i32, i32) {
    %c0_i32 = arith.constant 0 : i32
    %c0_i32_0 = arith.constant 0 : i32
    %c0_i32_1 = arith.constant 0 : i32
    return %c0_i32, %c0_i32_0 : i32, i32
  }
  func.func @transform_5(%arg0: i32) -> (i32, i32) {
    %c0_i32 = arith.constant 0 : i32
    %c0_i32_0 = arith.constant 0 : i32
    %c0_i32_1 = arith.constant 0 : i32
    return %c0_i32, %c0_i32_0 : i32, i32
  }
  func.func @transform_6(%arg0: i32) -> (i32, i32) {
    %c0_i32 = arith.constant 0 : i32
    %c0_i32_0 = arith.constant 0 : i32
    %c0_i32_1 = arith.constant 0 : i32
    return %c0_i32, %c0_i32_0 : i32, i32
  }
  func.func @transform_7(%arg0: i32) -> (i32, i32) {
    %c0_i32 = arith.constant 0 : i32
    %c0_i32_0 = arith.constant 0 : i32
    return %arg0, %c0_i32 : i32, i32
  }
}

</mosaic_0001>

<bundles_post_ra>
// kernel: actor_forward.1
= control target key start
LH: loop header
LB: loop body
LE: loop exit
PB: predicated region body
PF: predicated region fallthrough
CT: control target
= control target key end

     0   :  { %s1662_s24 = smov 0   ;;  %s1959_s0 = inlined_call_operand.vmem [shape: bf16[304,16], index: 0, kind: input, shape index: {}]   ;;  %s1960_s1 = inlined_call_operand.vmem [shape: bf16[16,128], index: 1, kind: input, shape index: {}]   ;;  %s1961_s2 = inlined_call_operand.vmem [shape: f32[1,128], index: 2, kind: input, shape index: {}]   ;;  %s1962_s3 = inlined_call_operand.vmem [shape: bf16[128,128], index: 3, kind: input, shape index: {}]   ;;  %s1963_s4 = inlined_call_operand.vmem [shape: f32[1,128], index: 4, kind: input, shape index: {}]   ;;  %s1964_s5 = inlined_call_operand.vmem [shape: bf16[128,128], index: 5, kind: input, shape index: {}]   ;;  %s1965_s6 = inlined_call_operand.vmem [shape: f32[1,128], index: 6, kind: input, shape index: {}]   ;;  %s1966_s7 = inlined_call_operand.vmem [shape: f32[304,128], index: 7, kind: output, shape index: {}]  }
   0x1 LB: > { %s1235_s25 = sadd.s32 4294967295, %s1620_s24   ;;  %p1239_p0 = scmp.ge.s32.totalorder %s1620_s24, 1  ;;  %s1620_s24 = sphi %s1662_s24, %s17_s24  }
   0x2   : > { %p238_p1 = scmp.lt.s32.totalorder %s1620_s24, 3 }
   0x4   : > { %p239_p2 = pnand %p1239_p0, %p238_p1 }
   0x5   : > { %v1435_v0 = vld [vmem:[%s1960_s1] sm:$0xff] (!%p239_p2)   ;;  %s270_s28 = smul.u32 (!%p239_p2), 19, %s1235_s25  ;;  %vm365_vm0 = vcmask (!%p239_p2), 130048   ;;  %v1447_v7 = vld [vmem:[%s1962_s3 + $0x8] sm:$0xff] (!%p239_p2)   ;;  %v1448_v10 = vld [vmem:[%s1962_s3 + $0x10] sm:$0xff] (!%p239_p2)  }
   0x6   : > { %242 = sbr.rel (%p239_p2) target bundleno = 1050 (0x41a), region = 48  ;;  %v1446_v1 = vld [vmem:[%s1962_s3] sm:$0xff] (!%p239_p2)   ;;  %1331 = vmatprep.subr.bf16.mxu0 (!%p239_p2), %v1435_v0  ;;  %1425 = vmatprep.subr.bf16.mxu1 (!%p239_p2), %v1435_v0  ;;  %v1449_v14 = vld [vmem:[%s1962_s3 + $0x18] sm:$0xff] (!%p239_p2)   ;;  %v1451_v16 = vld [vmem:[%s1962_s3 + $0x28] sm:$0xff] (!%p239_p2)  }
   0x7   : > { %p271_p3 = scmp.lt.s32.totalorder (!%p239_p2), %s270_s28, 37  ;;  %1332 = vmatpush3.bf16.msra.mxu0 (!%p239_p2), %v1435_v0  ;;  %1426 = vmatpush3.bf16.msra.mxu1 (!%p239_p2), %v1435_v0  ;;  %v1450_v15 = vld [vmem:[%s1962_s3 + $0x20] sm:$0xff] (!%p239_p2)   ;;  %v1452_v17 = vld [vmem:[%s1962_s3 + $0x30] sm:$0xff] (!%p239_p2)   ;;  %v1453_v18 = vld [vmem:[%s1962_s3 + $0x38] sm:$0xff] (!%p239_p2)  }
   0x8   : > { %1353 = vmatprep.subr.bf16.mxu1 (!%p239_p2), %v1446_v1  ;;  %v1454_v19 = vld [vmem:[%s1964_s5] sm:$0xff] (!%p239_p2)   ;;  %v1455_v20 = vld [vmem:[%s1964_s5 + $0x8] sm:$0xff] (!%p239_p2)   ;;  %v1456_v21 = vld [vmem:[%s1964_s5 + $0x10] sm:$0xff] (!%p239_p2)  }
   0x9   : > { %1389 = vmatprep.subr.bf16.mxu0 (!%p239_p2), %v1454_v19  ;;  %v1457_v22 = vld [vmem:[%s1964_s5 + $0x18] sm:$0xff] (!%p239_p2)   ;;  %v1728_v23 = vld [vmem:[%s1961_s2] ss:$0 sm:$0xff] (!%p239_p2) }
   0xd   : > { %s1968_s28 = smov (!%p271_p3, %s270_s28), 37 }
   0xe   : > { %s1240_s8 = sshll.u32 %s1968_s28, 2  ;;  %s1241_s29 = sshll.u32 %s1968_s28, 3 }
   0xf   : > { %s274_s11 = scalar_lea.vmem %s1959_s0, %s1240_s8  ;;  %s1916_s9 = scalar_lea.vmem %s1966_s7, %s1241_s29 }
  0x10   : > { %v1436_v2 = vld [vmem:[%s274_s11] sm:$0xff]   ;;  %v1437_v3 = vld [vmem:[%s274_s11 + $0x8] sm:$0xff]   ;;  %v1438_v4 = vld [vmem:[%s274_s11 + $0x10] sm:$0xff]  }
  0x11   : > { %1333 = vmatprep.mubr.msk.bf16.mxu0 %vm365_vm0, %v1436_v2  ;;  %v1439_v5 = vld [vmem:[%s274_s11 + $0x18] sm:$0xff]   ;;  %v1440_v6 = vld [vmem:[%s274_s11 + $0x20] sm:$0xff]   ;;  %v1445_v9 = vld [vmem:[%s274_s11 + $0x48] ss:$0 sps:$4 sm:$0xff]  }
  0x12   : > { %1334 = vmatmul.mubr.msk.bf16.vlgmr.msra.gmra.mrb[0].mxu0 %vm365_vm0, %v1437_v3  ;;  %v1444_v8 = vld [vmem:[%s274_s11 + $0x40] sm:$0xff]   ;;  %v1441_v11 = vld [vmem:[%s274_s11 + $0x28] sm:$0xff]   ;;  %v1442_v12 = vld [vmem:[%s274_s11 + $0x30] sm:$0xff]  }
  0x13   : > { %1337 = vmatprep.mubr.msk.bf16.mxu0 %vm365_vm0, %v1438_v4  ;;  %1349 = vmatprep.mubr.msk.bf16.mxu1 %vm365_vm0, %v1444_v8  ;;  %v1443_v13 = vld [vmem:[%s274_s11 + $0x38] sm:$0xff]  }
  0x14   : > { %1350 = vmatmul.mubr.msk.bf16.vlgmr.msra.gmra.mrb[0].mxu1 %vm365_vm0, %v1445_v9  ;;  %1390 = vmatpush3.bf16.msra.mxu0 %v1454_v19 }
  0x15   : > { %1354 = vmatpush3.bf16.msra.mxu1 %v1446_v1  ;;  %1391 = vmatprep.subr.bf16.mxu0 %v1455_v20 }
  0x16   : > { %1355 = vmatprep.subr.bf16.mxu1 %v1447_v7 }
  0x18   : > { %1392 = vmatpush3.bf16.msra.mxu0 %v1455_v20 }
  0x19   : > { %1356 = vmatpush3.bf16.msra.mxu1 %v1447_v7  ;;  %1393 = vmatprep.subr.bf16.mxu0 %v1456_v21 }
  0x1a   : > { %1338 = vmatmul.mubr.msk.bf16.gmra.mrb[4].mxu0 %vm365_vm0, %v1439_v5  ;;  %1357 = vmatprep.subr.bf16.mxu1 %v1448_v10 }
  0x1b   : > { %1341 = vmatprep.mubr.msk.bf16.mxu0 %vm365_vm0, %v1440_v6 }
  0x1c   : > { %1394 = vmatpush3.bf16.msra.mxu0 %v1456_v21 }
  0x1d   : > { %1358 = vmatpush3.bf16.msra.mxu1 %v1448_v10  ;;  %1395 = vmatprep.subr.bf16.mxu0 %v1457_v22 }
  0x1e   : > { %1359 = vmatprep.subr.bf16.mxu1 %v1449_v14 }
  0x20   : > { %1396 = vmatpush3.bf16.msra.mxu0 %v1457_v22 }
  0x21   : > { %1360 = vmatpush3.bf16.msra.mxu1 %v1449_v14 }
  0x22   : > { %1342 = vmatmul.mubr.msk.bf16.gmra.mrb[8].mxu0 %vm365_vm0, %v1441_v11  ;;  %1361 = vmatprep.subr.bf16.mxu1 %v1450_v15 }
  0x23   : > { %1345 = vmatprep.mubr.msk.bf16.mxu0 %vm365_vm0, %v1442_v12 }
  0x25   : > { %1362 = vmatpush3.bf16.msra.mxu1 %v1450_v15 }
  0x26   : > { %1363 = vmatprep.subr.bf16.mxu1 %v1451_v16 }
  0x29   : > { %1364 = vmatpush3.bf16.msra.mxu1 %v1451_v16 }
  0x2a   : > { %1346 = vmatmul.mubr.msk.bf16.gmra.mrb[12].mxu0 %vm365_vm0, %v1443_v13  ;;  %1365 = vmatprep.subr.bf16.mxu1 %v1452_v17 }
  0x2d   : > { %1366 = vmatpush3.bf16.msra.mxu1 %v1452_v17 }
  0x2e   : > { %1367 = vmatprep.subr.bf16.mxu1 %v1453_v18 }
  0x31   : > { %1368 = vmatpush3.bf16.msra.mxu1 %v1453_v18 }
  0xe5   : > { %v1335_v24 = vpop.f32.mrb[0].mxu0 }
  0xe6   : > { %v439_v25 = vadd.f32 %v1335_v24, %v1728_v23  ;;  %v430_v26 = vpop.f32.mrb[1].mxu0 }
  0xe7   : > { %v431_v27 = vadd.f32 %v1728_v23, %v430_v26  ;;  %v1336_v28 = vpop.f32.mrb[2].mxu0  ;;  %v1734_v33 = vpop.f32.mrb[0].mxu1 }
  0xe8   : > { %1462 = vtanh.f32 %v439_v25  ;;  %v442_v29 = vadd.f32 %v1336_v28, %v1728_v23  ;;  %v433_v30 = vpop.f32.mrb[3].mxu0  ;;  %v494_v36 = vpop.f32.mrb[1].mxu1  ;;  %v503_v18 = vadd.f32 %v1734_v33, %v1728_v23 }
  0xe9   : > { %1464 = vtanh.f32 %v431_v27  ;;  %v434_v31 = vadd.f32 %v1728_v23, %v433_v30  ;;  %v1352_v39 = vpop.f32.mrb[2].mxu1  ;;  %v495_v44 = vadd.f32 %v1728_v23, %v494_v36  ;;  %v1460_v30 = vld [vmem:[%s1964_s5 + $0x30] sm:$0xff]  }
  0xea   : > { %1466 = vtanh.f32 %v442_v29  ;;  %v497_v42 = vpop.f32.mrb[3].mxu1  ;;  %v1459_v29 = vld [vmem:[%s1964_s5 + $0x28] sm:$0xff]  }
  0xeb   : > { %1468 = vtanh.f32 %v434_v31  ;;  %v498_v46 = vadd.f32 %v1728_v23, %v497_v42  ;;  %v1461_v31 = vld [vmem:[%s1964_s5 + $0x38] sm:$0xff]  }
  0xed   : > { %v1339_v32 = vpop.f32.mrb[4].mxu0 }
  0xee   : > { %v455_v34 = vadd.f32 %v1339_v32, %v1728_v23  ;;  %v446_v35 = vpop.f32.mrb[5].mxu0  ;;  %v1767_v32 = vld [vmem:[%s1963_s4] ss:$0 sm:$0xff] }
  0xef   : > { %v447_v37 = vadd.f32 %v1728_v23, %v446_v35  ;;  %v1340_v38 = vpop.f32.mrb[6].mxu0 }
  0xf0   : > { %1470 = vtanh.f32 %v455_v34  ;;  %v458_v40 = vadd.f32 %v1340_v38, %v1728_v23  ;;  %v449_v41 = vpop.f32.mrb[7].mxu0 }
  0xf1   : > { %1472 = vtanh.f32 %v447_v37  ;;  %v450_v43 = vadd.f32 %v1728_v23, %v449_v41 }
  0xf2   : > { %v1463_v45 = vpop.eup %1462  ;;  %1474 = vtanh.f32 %v458_v40 }
  0xf3   : > { %v1465_v47 = vpop.eup %1464  ;;  %1476 = vtanh.f32 %v450_v43 }
  0xf4   : > { %v1467_v48 = vpop.eup %1466  ;;  %1478 = vtanh.f32 %v495_v44 }
  0xf5   : > { %v1469_v49 = vpop.eup %1468  ;;  %v1343_v50 = vpop.f32.mrb[8].mxu0  ;;  %v528_v51 = vpack.c.bf16 %v1467_v48, %v1463_v45  ;;  %1480 = vtanh.f32 %v498_v46 }
  0xf6   : > { %v471_v52 = vadd.f32 %v1343_v50, %v1728_v23  ;;  %v462_v53 = vpop.f32.mrb[9].mxu0  ;;  %v527_v54 = vpack.c.bf16 %v1469_v49, %v1465_v47 }
  0xf7   : > { %v463_v55 = vadd.f32 %v1728_v23, %v462_v53  ;;  %v1344_v56 = vpop.f32.mrb[10].mxu0 }
  0xf8   : > { %1482 = vtanh.f32 %v471_v52  ;;  %v474_v57 = vadd.f32 %v1344_v56, %v1728_v23  ;;  %v465_v58 = vpop.f32.mrb[11].mxu0  ;;  %1369 = vmatprep.mubr.bf16.mxu1 %v527_v54 }
  0xf9   : > { %1484 = vtanh.f32 %v463_v55  ;;  %v466_v59 = vadd.f32 %v1728_v23, %v465_v58  ;;  %1370 = vmatmul.mubr.bf16.vlgmr.msra.gmra.mrb[4].mxu1 %v528_v51 }
  0xfa   : > { %v1471_v60 = vpop.eup %1470  ;;  %1486 = vtanh.f32 %v474_v57 }
  0xfb   : > { %v1473_v61 = vpop.eup %1472  ;;  %1488 = vtanh.f32 %v466_v59 }
  0xfc   : > { %v1475_v62 = vpop.eup %1474 }
  0xfd   : > { %v1477_v63 = vpop.eup %1476  ;;  %v1347_v0 = vpop.f32.mrb[12].mxu0  ;;  %v530_v1 = vpack.c.bf16 %v1475_v62, %v1471_v60 }
  0xfe   : > { %v487_v2 = vadd.f32 %v1347_v0, %v1728_v23  ;;  %v478_v3 = vpop.f32.mrb[13].mxu0  ;;  %v529_v4 = vpack.c.bf16 %v1477_v63, %v1473_v61  ;;  %v1479_v5 = vpop.eup %1478 }
  0xff   : > { %v479_v6 = vadd.f32 %v1728_v23, %v478_v3  ;;  %v1348_v7 = vpop.f32.mrb[14].mxu0  ;;  %v1481_v8 = vpop.eup %1480 }
 0x100   : > { %1490 = vtanh.f32 %v487_v2  ;;  %v490_v9 = vadd.f32 %v1348_v7, %v1728_v23  ;;  %v481_v10 = vpop.f32.mrb[15].mxu0  ;;  %1373 = vmatprep.mubr.bf16.mxu1 %v529_v4  ;;  %v535_v12 = vpack.c.bf16 %v1481_v8, %v1479_v5 }
 0x101   : > { %1492 = vtanh.f32 %v479_v6  ;;  %v482_v11 = vadd.f32 %v1728_v23, %v481_v10  ;;  %1374 = vmatmul.mubr.bf16.gmra.mrb[8].mxu1 %v530_v1  ;;  %v1458_v23 = vld [vmem:[%s1964_s5 + $0x20] sm:$0xff]  }
 0x102   : > { %v1483_v13 = vpop.eup %1482  ;;  %1494 = vtanh.f32 %v490_v9  ;;  %1397 = vmatprep.subr.bf16.mxu0 %v1458_v23 }
 0x103   : > { %v1485_v14 = vpop.eup %1484  ;;  %1496 = vtanh.f32 %v482_v11  ;;  %1398 = vmatpush3.bf16.msra.mxu0 %v1458_v23 }
 0x104   : > { %v1487_v15 = vpop.eup %1486  ;;  %1498 = vtanh.f32 %v503_v18  ;;  %1399 = vmatprep.subr.bf16.mxu0 %v1459_v29 }
 0x105   : > { %v1489_v16 = vpop.eup %1488  ;;  %v532_v17 = vpack.c.bf16 %v1487_v15, %v1483_v13 }
 0x106   : > { %v531_v19 = vpack.c.bf16 %v1489_v16, %v1485_v14 }
 0x107   : > { %1400 = vmatpush3.bf16.msra.mxu0 %v1459_v29 }
 0x108   : > { %1377 = vmatprep.mubr.bf16.mxu1 %v531_v19  ;;  %1401 = vmatprep.subr.bf16.mxu0 %v1460_v30 }
 0x109   : > { %1378 = vmatmul.mubr.bf16.gmra.mrb[12].mxu1 %v532_v17 }
 0x10a   : > { %v1491_v20 = vpop.eup %1490 }
 0x10b   : > { %v1493_v21 = vpop.eup %1492  ;;  %1402 = vmatpush3.bf16.msra.mxu0 %v1460_v30 }
 0x10c   : > { %v1495_v22 = vpop.eup %1494  ;;  %1403 = vmatprep.subr.bf16.mxu0 %v1461_v31 }
 0x10d   : > { %v1497_v24 = vpop.eup %1496  ;;  %v534_v25 = vpack.c.bf16 %v1495_v22, %v1491_v20 }
 0x10e   : > { %v533_v26 = vpack.c.bf16 %v1497_v24, %v1493_v21  ;;  %v1499_v27 = vpop.eup %1498 }
 0x10f   : > { %v536_v28 = vpack.c.bf16 %v1499_v27, %v1499_v27  ;;  %1404 = vmatpush3.bf16.msra.mxu0 %v1461_v31 }
 0x110   : > { %1381 = vmatprep.mubr.bf16.mxu1 %v533_v26 }
 0x111   : > { %1382 = vmatmul.mubr.bf16.gmra.mrb[16].mxu1 %v534_v25 }
 0x112   : > { %1385 = vmatprep.mubr.bf16.mxu1 %v535_v12 }
 0x119   : > { %1386 = vmatmul.mubr.bf16.gmra.mrb[20].mxu1 %v536_v28 }
 0x1cc   : > { %v1371_v33 = vpop.f32.mrb[4].mxu1 }
 0x1cd   : > { %v651_v34 = vadd.f32 %v1371_v33, %v1767_v32  ;;  %v642_v35 = vpop.f32.mrb[5].mxu1 }
 0x1ce   : > { %v643_v36 = vadd.f32 %v1767_v32, %v642_v35  ;;  %v1372_v37 = vpop.f32.mrb[6].mxu1 }
 0x1cf   : > { %1500 = vtanh.f32 %v651_v34  ;;  %v654_v38 = vadd.f32 %v1372_v37, %v1767_v32  ;;  %v645_v39 = vpop.f32.mrb[7].mxu1 }
 0x1d0   : > { %1502 = vtanh.f32 %v643_v36  ;;  %v646_v40 = vadd.f32 %v1767_v32, %v645_v39 }
 0x1d1   : > { %1504 = vtanh.f32 %v654_v38 }
 0x1d2   : > { %1506 = vtanh.f32 %v646_v40 }
 0x1d4   : > { %v1375_v41 = vpop.f32.mrb[8].mxu1 }
 0x1d5   : > { %v667_v42 = vadd.f32 %v1375_v41, %v1767_v32  ;;  %v658_v43 = vpop.f32.mrb[9].mxu1 }
 0x1d6   : > { %v659_v44 = vadd.f32 %v1767_v32, %v658_v43  ;;  %v1376_v45 = vpop.f32.mrb[10].mxu1 }
 0x1d7   : > { %1508 = vtanh.f32 %v667_v42  ;;  %v670_v46 = vadd.f32 %v1376_v45, %v1767_v32  ;;  %v661_v47 = vpop.f32.mrb[11].mxu1 }
 0x1d8   : > { %1510 = vtanh.f32 %v659_v44  ;;  %v662_v48 = vadd.f32 %v1767_v32, %v661_v47 }
 0x1d9   : > { %v1501_v49 = vpop.eup %1500  ;;  %1512 = vtanh.f32 %v670_v46 }
 0x1da   : > { %v1503_v50 = vpop.eup %1502  ;;  %1514 = vtanh.f32 %v662_v48 }
 0x1db   : > { %v1505_v51 = vpop.eup %1504 }
 0x1dc   : > { %v1507_v52 = vpop.eup %1506  ;;  %v1379_v53 = vpop.f32.mrb[12].mxu1  ;;  %v740_v54 = vpack.c.bf16 %v1505_v51, %v1501_v49 }
 0x1dd   : > { %v683_v55 = vadd.f32 %v1379_v53, %v1767_v32  ;;  %v674_v56 = vpop.f32.mrb[13].mxu1  ;;  %v739_v57 = vpack.c.bf16 %v1507_v52, %v1503_v50 }
 0x1de   : > { %v675_v58 = vadd.f32 %v1767_v32, %v674_v56  ;;  %v1380_v59 = vpop.f32.mrb[14].mxu1 }
 0x1df   : > { %1516 = vtanh.f32 %v683_v55  ;;  %v686_v60 = vadd.f32 %v1380_v59, %v1767_v32  ;;  %v677_v61 = vpop.f32.mrb[15].mxu1  ;;  %1405 = vmatprep.mubr.bf16.mxu0 %v739_v57 }
 0x1e0   : > { %1518 = vtanh.f32 %v675_v58  ;;  %v678_v62 = vadd.f32 %v1767_v32, %v677_v61  ;;  %1406 = vmatmul.mubr.bf16.vlgmr.msra.gmra.mrb[16].mxu0 %v740_v54 }
 0x1e1   : > { %v1509_v63 = vpop.eup %1508  ;;  %1520 = vtanh.f32 %v686_v60 }
 0x1e2   : > { %v1511_v0 = vpop.eup %1510  ;;  %1522 = vtanh.f32 %v678_v62 }
 0x1e3   : > { %v1513_v1 = vpop.eup %1512 }
 0x1e4   : > { %v1515_v2 = vpop.eup %1514  ;;  %v1383_v3 = vpop.f32.mrb[16].mxu1  ;;  %v742_v4 = vpack.c.bf16 %v1513_v1, %v1509_v63 }
 0x1e5   : > { %v699_v5 = vadd.f32 %v1383_v3, %v1767_v32  ;;  %v690_v6 = vpop.f32.mrb[17].mxu1  ;;  %v741_v7 = vpack.c.bf16 %v1515_v2, %v1511_v0 }
 0x1e6   : > { %v691_v8 = vadd.f32 %v1767_v32, %v690_v6  ;;  %v1384_v9 = vpop.f32.mrb[18].mxu1 }
 0x1e7   : > { %1524 = vtanh.f32 %v699_v5  ;;  %v702_v10 = vadd.f32 %v1384_v9, %v1767_v32  ;;  %v693_v11 = vpop.f32.mrb[19].mxu1  ;;  %1409 = vmatprep.mubr.bf16.mxu0 %v741_v7 }
 0x1e8   : > { %1526 = vtanh.f32 %v691_v8  ;;  %v694_v12 = vadd.f32 %v1767_v32, %v693_v11  ;;  %1410 = vmatmul.mubr.bf16.gmra.mrb[20].mxu0 %v742_v4 }
 0x1e9   : > { %v1517_v13 = vpop.eup %1516  ;;  %1528 = vtanh.f32 %v702_v10 }
 0x1ea   : > { %v1519_v14 = vpop.eup %1518  ;;  %1530 = vtanh.f32 %v694_v12 }
 0x1eb   : > { %v1521_v15 = vpop.eup %1520 }
 0x1ec   : > { %v1523_v16 = vpop.eup %1522  ;;  %v1387_v17 = vpop.f32.mrb[20].mxu1  ;;  %v744_v18 = vpack.c.bf16 %v1521_v15, %v1517_v13 }
 0x1ed   : > { %v715_v19 = vadd.f32 %v1387_v17, %v1767_v32  ;;  %v706_v20 = vpop.f32.mrb[21].mxu1  ;;  %v743_v21 = vpack.c.bf16 %v1523_v16, %v1519_v14 }
 0x1ee   : > { %v707_v22 = vadd.f32 %v1767_v32, %v706_v20  ;;  %v1388_v24 = vpop.f32.mrb[22].mxu1 }
 0x1ef   : > { %v709_v25 = vpop.f32.mrb[23].mxu1  ;;  %1413 = vmatprep.mubr.bf16.mxu0 %v743_v21  ;;  %1532 = vtanh.f32 %v715_v19 }
 0x1f0   : > { %v710_v26 = vadd.f32 %v1767_v32, %v709_v25  ;;  %1414 = vmatmul.mubr.bf16.gmra.mrb[24].mxu0 %v744_v18  ;;  %1534 = vtanh.f32 %v707_v22  ;;  %v1273_v32 = vld [vmem:[%s1965_s6] ss:$0 sm:$0xff] }
 0x1f1   : > { %v1525_v27 = vpop.eup %1524 }
 0x1f2   : > { %v1527_v28 = vpop.eup %1526  ;;  %1536 = vtanh.f32 %v710_v26 }
 0x1f3   : > { %v1529_v23 = vpop.eup %1528 }
 0x1f4   : > { %v1531_v29 = vpop.eup %1530  ;;  %v746_v30 = vpack.c.bf16 %v1529_v23, %v1525_v27 }
 0x1f5   : > { %v745_v31 = vpack.c.bf16 %v1531_v29, %v1527_v28 }
 0x1f7   : > { %1417 = vmatprep.mubr.bf16.mxu0 %v745_v31 }
 0x1f8   : > { %1418 = vmatmul.mubr.bf16.gmra.mrb[28].mxu0 %v746_v30 }
 0x1f9   : > { %v1533_v33 = vpop.eup %1532 }
 0x1fa   : > { %v1535_v34 = vpop.eup %1534  ;;  %v748_v37 = vpack.c.bf16 %v1533_v33, %v1533_v33 }
 0x1fc   : > { %v1537_v35 = vpop.eup %1536 }
 0x1fd   : > { %v747_v36 = vpack.c.bf16 %v1537_v35, %v1535_v34 }
 0x1ff   : > { %1421 = vmatprep.mubr.bf16.mxu0 %v747_v36 }
 0x200   : > { %1422 = vmatmul.mubr.bf16.gmra.mrb[32].mxu0 %v748_v37 }
 0x2b3   : > { %v1407_v38 = vpop.f32.mrb[16].mxu0 }
 0x2b4   : > { %v863_v39 = vadd.f32 %v1407_v38, %v1273_v32  ;;  %v854_v40 = vpop.f32.mrb[17].mxu0 }
 0x2b5   : > { %v855_v41 = vadd.f32 %v1273_v32, %v854_v40  ;;  %v1408_v42 = vpop.f32.mrb[18].mxu0 }
 0x2b6   : > { %936 = vmax.xlane.f32.xlu1 %v863_v39  ;;  %v857_v43 = vpop.f32.mrb[19].mxu0  ;;  %v866_v44 = vadd.f32 %v1408_v42, %v1273_v32 }
 0x2b7   : > { %932 = vmax.xlane.f32.xlu0 %v855_v41  ;;  %v1791_v45 = vadd.f32 %v1273_v32, %v857_v43 }
 0x2ba   : > { %938 = vmax.xlane.f32.xlu1 %v866_v44 }
 0x2bb   : > { %v1411_v46 = vpop.f32.mrb[20].mxu0  ;;  %934 = vmax.xlane.f32.xlu0 %v1791_v45 }
 0x2bc   : > { %v1794_v47 = vadd.f32 %v1411_v46, %v1273_v32  ;;  %v870_v48 = vpop.f32.mrb[21].mxu0 }
 0x2bd   : > { %v1412_v49 = vpop.f32.mrb[22].mxu0  ;;  %v1800_v52 = vadd.f32 %v1273_v32, %v870_v48 }
 0x2be   : > { %v1796_v50 = vadd.f32 %v1412_v49, %v1273_v32  ;;  %v873_v51 = vpop.f32.mrb[23].mxu0 }
 0x2bf   : > { %944 = vmax.xlane.f32.xlu0 %v1794_v47  ;;  %v1802_v53 = vadd.f32 %v1273_v32, %v873_v51 }
 0x2c0   : > { %946 = vmax.xlane.f32.xlu1 %v1796_v50 }
 0x2c3   : > { %v1415_v54 = vpop.f32.mrb[24].mxu0  ;;  %940 = vmax.xlane.f32.xlu0 %v1800_v52 }
 0x2c4   : > { %v1805_v55 = vadd.f32 %v1415_v54, %v1273_v32  ;;  %v886_v56 = vpop.f32.mrb[25].mxu0  ;;  %942 = vmax.xlane.f32.xlu1 %v1802_v53 }
 0x2c5   : > { %v1416_v57 = vpop.f32.mrb[26].mxu0  ;;  %v1812_v60 = vadd.f32 %v1273_v32, %v886_v56 }
 0x2c6   : > { %v1808_v58 = vadd.f32 %v1416_v57, %v1273_v32  ;;  %v889_v59 = vpop.f32.mrb[27].mxu0 }
 0x2c7   : > { %952 = vmax.xlane.f32.xlu0 %v1805_v55  ;;  %v1814_v61 = vadd.f32 %v1273_v32, %v889_v59 }
 0x2c8   : > { %954 = vmax.xlane.f32.xlu1 %v1808_v58 }
 0x2cb   : > { %v1419_v62 = vpop.f32.mrb[28].mxu0  ;;  %948 = vmax.xlane.f32.xlu0 %v1812_v60 }
 0x2cc   : > { %v1817_v63 = vadd.f32 %v1419_v62, %v1273_v32  ;;  %v902_v0 = vpop.f32.mrb[29].mxu0  ;;  %950 = vmax.xlane.f32.xlu1 %v1814_v61 }
 0x2cd   : > { %v1420_v1 = vpop.f32.mrb[30].mxu0  ;;  %v1824_v4 = vadd.f32 %v1273_v32, %v902_v0 }
 0x2ce   : > { %v1820_v2 = vadd.f32 %v1420_v1, %v1273_v32  ;;  %v905_v3 = vpop.f32.mrb[31].mxu0 }
 0x2cf   : > { %960 = vmax.xlane.f32.xlu0 %v1817_v63  ;;  %v1826_v5 = vadd.f32 %v1273_v32, %v905_v3 }
 0x2d0   : > { %962 = vmax.xlane.f32.xlu1 %v1820_v2 }
 0x2d3   : > { %v1423_v6 = vpop.f32.mrb[32].mxu0  ;;  %956 = vmax.xlane.f32.xlu0 %v1824_v4 }
 0x2d4   : > { %v918_v7 = vpop.f32.mrb[33].mxu0  ;;  %958 = vmax.xlane.f32.xlu1 %v1826_v5  ;;  %v1835_v12 = vadd.f32 %v1423_v6, %v1273_v32 }
 0x2d5   : > { %v1830_v8 = vadd.f32 %v1273_v32, %v918_v7  ;;  %v1424_v9 = vpop.f32.mrb[34].mxu0 }
 0x2d6   : > { %v921_v10 = vpop.f32.mrb[35].mxu0 }
 0x2d7   : > { %v1832_v11 = vadd.f32 %v1273_v32, %v921_v10  ;;  %964 = vmax.xlane.f32.xlu0 %v1830_v8 }
 0x2d9   : > { %966 = vmax.xlane.f32.xlu1 %v1832_v11 }
 0x2db   : > { %968 = vmax.xlane.f32.xlu0 %v1835_v12 }
 0x343   : > { %v937_v13 = vpop.xlane.xlu1 %936 }
 0x344   : > { %v972_v14 = vsub.f32 %v863_v39, %v937_v13  ;;  %v933_v15 = vpop.xlane.xlu0 %932 }
 0x345   : > { %v970_v16 = vsub.f32 %v855_v41, %v933_v15 }
 0x346   : > { %v993_v17 = vmul.f32 1.442695, %v972_v14 }
 0x347   : > { %v989_v18 = vmul.f32 1.442695, %v970_v16  ;;  %v939_v19 = vpop.xlane.xlu1 %938 }
 0x348   : > { %1538 = vpow2.f32 %v993_v17  ;;  %v973_v20 = vsub.f32 %v866_v44, %v939_v19  ;;  %v935_v21 = vpop.xlane.xlu0 %934 }
 0x349   : > { %v971_v22 = vsub.f32 %v1791_v45, %v935_v21  ;;  %1540 = vpow2.f32 %v989_v18 }
 0x34a   : > { %v995_v24 = vmul.f32 1.442695, %v973_v20 }
 0x34b   : > { %v991_v25 = vmul.f32 1.442695, %v971_v22 }
 0x34c   : > { %1542 = vpow2.f32 %v995_v24  ;;  %v945_v26 = vpop.xlane.xlu0 %944 }
 0x34d   : > { %v976_v27 = vsub.f32 %v1794_v47, %v945_v26  ;;  %v947_v28 = vpop.xlane.xlu1 %946  ;;  %1544 = vpow2.f32 %v991_v25 }
 0x34e   : > { %v977_v23 = vsub.f32 %v1796_v50, %v947_v28 }
 0x34f   : > { %v1001_v29 = vmul.f32 1.442695, %v976_v27 }
 0x350   : > { %v1003_v30 = vmul.f32 1.442695, %v977_v23  ;;  %v941_v31 = vpop.xlane.xlu0 %940 }
 0x351   : > { %1546 = vpow2.f32 %v1001_v29  ;;  %v974_v33 = vsub.f32 %v1800_v52, %v941_v31  ;;  %v943_v34 = vpop.xlane.xlu1 %942 }
 0x352   : > { %v1843_v35 = vpop.eup %1538  ;;  %v975_v36 = vsub.f32 %v1802_v53, %v943_v34  ;;  %1548 = vpow2.f32 %v1003_v30 }
 0x353   : > { %v997_v37 = vmul.f32 1.442695, %v974_v33  ;;  %1031 = vadd.xlane.f32.xlu1 %v1843_v35  ;;  %v1847_v39 = vpop.eup %1540 }
 0x354   : > { %v999_v32 = vmul.f32 1.442695, %v975_v36  ;;  %v953_v38 = vpop.xlane.xlu0 %952 }
 0x355   : > { %1550 = vpow2.f32 %v997_v37  ;;  %v980_v40 = vsub.f32 %v1805_v55, %v953_v38  ;;  %v955_v41 = vpop.xlane.xlu1 %954 }
 0x356   : > { %v1850_v42 = vpop.eup %1542  ;;  %v981_v43 = vsub.f32 %v1808_v58, %v955_v41  ;;  %1552 = vpow2.f32 %v999_v32 }
 0x357   : > { %v1009_v44 = vmul.f32 1.442695, %v980_v40  ;;  %1033 = vadd.xlane.f32.xlu0 %v1850_v42  ;;  %1027 = vadd.xlane.f32.xlu1 %v1847_v39  ;;  %v1856_v49 = vpop.eup %1544 }
 0x358   : > { %v1011_v45 = vmul.f32 1.442695, %v981_v43  ;;  %v949_v46 = vpop.xlane.xlu0 %948 }
 0x359   : > { %1554 = vpow2.f32 %v1009_v44  ;;  %v978_v47 = vsub.f32 %v1812_v60, %v949_v46  ;;  %v951_v48 = vpop.xlane.xlu1 %950 }
 0x35a   : > { %v979_v50 = vsub.f32 %v1814_v61, %v951_v48  ;;  %1556 = vpow2.f32 %v1011_v45 }
 0x35b   : > { %v1859_v51 = vpop.eup %1546  ;;  %v1005_v52 = vmul.f32 1.442695, %v978_v47  ;;  %1029 = vadd.xlane.f32.xlu0 %v1856_v49 }
 0x35c   : > { %v1007_v53 = vmul.f32 1.442695, %v979_v50  ;;  %1039 = vadd.xlane.f32.xlu1 %v1859_v51  ;;  %v961_v54 = vpop.xlane.xlu0 %960  ;;  %v1864_v57 = vpop.eup %1548 }
 0x35d   : > { %1558 = vpow2.f32 %v1005_v52  ;;  %v984_v55 = vsub.f32 %v1817_v63, %v961_v54  ;;  %v963_v56 = vpop.xlane.xlu1 %962 }
 0x35e   : > { %v985_v58 = vsub.f32 %v1820_v2, %v963_v56  ;;  %1560 = vpow2.f32 %v1007_v53 }
 0x35f   : > { %v1867_v59 = vpop.eup %1550  ;;  %v1017_v60 = vmul.f32 1.442695, %v984_v55  ;;  %1041 = vadd.xlane.f32.xlu0 %v1864_v57 }
 0x360   : > { %v1019_v61 = vmul.f32 1.442695, %v985_v58  ;;  %1035 = vadd.xlane.f32.xlu1 %v1867_v59  ;;  %v957_v62 = vpop.xlane.xlu0 %956  ;;  %v1872_v63 = vpop.eup %1552 }
 0x361   : > { %1562 = vpow2.f32 %v1017_v60  ;;  %v982_v0 = vsub.f32 %v1824_v4, %v957_v62  ;;  %v959_v1 = vpop.xlane.xlu1 %958 }
 0x362   : > { %v983_v3 = vsub.f32 %v1826_v5, %v959_v1  ;;  %1564 = vpow2.f32 %v1019_v61 }
 0x363   : > { %v1875_v6 = vpop.eup %1554  ;;  %v1013_v2 = vmul.f32 1.442695, %v982_v0  ;;  %1037 = vadd.xlane.f32.xlu0 %v1872_v63 }
 0x364   : > { %v1015_v7 = vmul.f32 1.442695, %v983_v3  ;;  %1047 = vadd.xlane.f32.xlu1 %v1875_v6  ;;  %v965_v9 = vpop.xlane.xlu0 %964  ;;  %v1880_v13 = vpop.eup %1556 }
 0x365   : > { %1566 = vpow2.f32 %v1013_v2  ;;  %v986_v10 = vsub.f32 %v1830_v8, %v965_v9 }
 0x366   : > { %v967_v4 = vpop.xlane.xlu1 %966  ;;  %1568 = vpow2.f32 %v1015_v7 }
 0x367   : > { %v1882_v14 = vpop.eup %1558  ;;  %v1021_v15 = vmul.f32 1.442695, %v986_v10  ;;  %v987_v5 = vsub.f32 %v1832_v11, %v967_v4  ;;  %1049 = vadd.xlane.f32.xlu0 %v1880_v13 }
 0x368   : > { %1043 = vadd.xlane.f32.xlu1 %v1882_v14  ;;  %v969_v16 = vpop.xlane.xlu0 %968  ;;  %v1888_v19 = vpop.eup %1560 }
 0x369   : > { %1570 = vpow2.f32 %v1021_v15  ;;  %v1023_v17 = vmul.f32 1.442695, %v987_v5  ;;  %v988_v18 = vsub.f32 %v1835_v12, %v969_v16 }
 0x36b   : > { %v1890_v8 = vpop.eup %1562  ;;  %1572 = vpow2.f32 %v1023_v17  ;;  %v1025_v20 = vmul.f32 1.442695, %v988_v18  ;;  %1045 = vadd.xlane.f32.xlu0 %v1888_v19 }
 0x36c   : > { %1055 = vadd.xlane.f32.xlu1 %v1890_v8  ;;  %v1894_v11 = vpop.eup %1564 }
 0x36d   : > { %1574 = vpow2.f32 %v1025_v20 }
 0x36f   : > { %v1896_v21 = vpop.eup %1566  ;;  %1057 = vadd.xlane.f32.xlu0 %v1894_v11 }
 0x370   : > { %1051 = vadd.xlane.f32.xlu1 %v1896_v21  ;;  %v1900_v12 = vpop.eup %1568 }
 0x373   : > { %v1902_v22 = vpop.eup %1570  ;;  %1053 = vadd.xlane.f32.xlu0 %v1900_v12 }
 0x374   : > { %1059 = vadd.xlane.f32.xlu1 %v1902_v22 }
 0x375   : > { %v1906_v24 = vpop.eup %1572 }
 0x377   : > { %v1908_v25 = vpop.eup %1574  ;;  %1061 = vadd.xlane.f32.xlu0 %v1906_v24 }
 0x378   : > { %1063 = vadd.xlane.f32.xlu1 %v1908_v25 }
 0x3e0   : > { %v1032_v26 = vpop.xlane.xlu1 %1031 }
 0x3e1   : > { %1576 = vrcp.f32 %v1032_v26 }
 0x3e4   : > { %v1028_v27 = vpop.xlane.xlu1 %1027  ;;  %v1034_v28 = vpop.xlane.xlu0 %1033 }
 0x3e5   : > { %1578 = vrcp.f32 %v1028_v27 }
 0x3e6   : > { %1580 = vrcp.f32 %v1034_v28 }
 0x3e8   : > { %v1030_v23 = vpop.xlane.xlu0 %1029 }
 0x3e9   : > { %1582 = vrcp.f32 %v1030_v23  ;;  %v1040_v29 = vpop.xlane.xlu1 %1039 }
 0x3ea   : > { %1584 = vrcp.f32 %v1040_v29 }
 0x3eb   : > { %v1577_v30 = vpop.eup %1576 }
 0x3ec   : > { %v1086_v31 = vmul.f32 %v1577_v30, %v1032_v26  ;;  %v1042_v33 = vpop.xlane.xlu0 %1041 }
 0x3ed   : > { %1586 = vrcp.f32 %v1042_v33  ;;  %v1036_v34 = vpop.xlane.xlu1 %1035 }
 0x3ee   : > { %v1105_v36 = vsub.f32 2.0, %v1086_v31  ;;  %1588 = vrcp.f32 %v1036_v34 }
 0x3ef   : > { %v1579_v37 = vpop.eup %1578 }
 0x3f0   : > { %v1581_v32 = vpop.eup %1580  ;;  %v1124_v38 = vmul.f32 %v1577_v30, %v1105_v36  ;;  %v1084_v40 = vmul.f32 %v1579_v37, %v1028_v27  ;;  %v1038_v41 = vpop.xlane.xlu0 %1037 }
 0x3f1   : > { %v1087_v43 = vmul.f32 %v1581_v32, %v1034_v28  ;;  %1590 = vrcp.f32 %v1038_v41  ;;  %v1048_v44 = vpop.xlane.xlu1 %1047 }
 0x3f2   : > { %v1143_v45 = vmul.f32 %v1843_v35, %v1124_v38  ;;  %v1103_v46 = vsub.f32 2.0, %v1084_v40  ;;  %1592 = vrcp.f32 %v1048_v44 }
 0x3f3   : > { %v1583_v47 = vpop.eup %1582  ;;  %v1106_v48 = vsub.f32 2.0, %v1087_v43 }
 0x3f4   : > { %v1585_v50 = vpop.eup %1584  ;;  %1162 = vst [vmem:[%s1916_s9 + $0x10] sm:$0xff] %v1143_v45  ;;  %v1122_v52 = vmul.f32 %v1579_v37, %v1103_v46  ;;  %v1085_v53 = vmul.f32 %v1583_v47, %v1030_v23  ;;  %v1050_v54 = vpop.xlane.xlu0 %1049 }
 0x3f5   : > { %v1125_v55 = vmul.f32 %v1581_v32, %v1106_v48  ;;  %v1090_v56 = vmul.f32 %v1585_v50, %v1040_v29  ;;  %1594 = vrcp.f32 %v1050_v54  ;;  %v1044_v58 = vpop.xlane.xlu1 %1043 }
 0x3f6   : > { %v1141_v60 = vmul.f32 %v1847_v39, %v1122_v52  ;;  %v1104_v61 = vsub.f32 2.0, %v1085_v53  ;;  %1596 = vrcp.f32 %v1044_v58 }
 0x3f7   : > { %v1587_v35 = vpop.eup %1586  ;;  %v1144_v62 = vmul.f32 %v1850_v42, %v1125_v55  ;;  %v1109_v0 = vsub.f32 2.0, %v1090_v56 }
 0x3f8   : > { %v1589_v1 = vpop.eup %1588  ;;  %1160 = vst [vmem:[%s1916_s9] sm:$0xff] %v1141_v60  ;;  %v1123_v3 = vmul.f32 %v1583_v47, %v1104_v61  ;;  %v1091_v2 = vmul.f32 %v1587_v35, %v1042_v33  ;;  %v1046_v7 = vpop.xlane.xlu0 %1045 }
 0x3f9   : > { %1163 = vst [vmem:[%s1916_s9 + $0x18] sm:$0xff] %v1144_v62  ;;  %v1128_v9 = vmul.f32 %v1585_v50, %v1109_v0  ;;  %v1088_v10 = vmul.f32 %v1589_v1, %v1036_v34  ;;  %1598 = vrcp.f32 %v1046_v7  ;;  %v1056_v4 = vpop.xlane.xlu1 %1055 }
 0x3fa   : > { %v1142_v39 = vmul.f32 %v1856_v49, %v1123_v3  ;;  %v1110_v15 = vsub.f32 2.0, %v1091_v2  ;;  %1600 = vrcp.f32 %v1056_v4 }
 0x3fb   : > { %v1591_v5 = vpop.eup %1590  ;;  %v1147_v42 = vmul.f32 %v1859_v51, %v1128_v9  ;;  %v1107_v16 = vsub.f32 2.0, %v1088_v10 }
 0x3fc   : > { %v1593_v17 = vpop.eup %1592  ;;  %1161 = vst [vmem:[%s1916_s9 + $0x8] sm:$0xff] %v1142_v39  ;;  %v1129_v18 = vmul.f32 %v1587_v35, %v1110_v15  ;;  %v1089_v20 = vmul.f32 %v1591_v5, %v1038_v41  ;;  %v1058_v26 = vpop.xlane.xlu0 %1057 }
 0x3fd   : > { %1166 = vst [vmem:[%s1916_s9 + $0x30] sm:$0xff] %v1147_v42  ;;  %v1126_v27 = vmul.f32 %v1589_v1, %v1107_v16  ;;  %v1094_v28 = vmul.f32 %v1593_v17, %v1048_v44  ;;  %1602 = vrcp.f32 %v1058_v26  ;;  %v1052_v23 = vpop.xlane.xlu1 %1051 }
 0x3fe   : > { %v1148_v49 = vmul.f32 %v1864_v57, %v1129_v18  ;;  %v1108_v29 = vsub.f32 2.0, %v1089_v20  ;;  %1604 = vrcp.f32 %v1052_v23 }
 0x3ff   : > { %v1595_v30 = vpop.eup %1594  ;;  %v1145_v51 = vmul.f32 %v1867_v59, %v1126_v27  ;;  %v1113_v31 = vsub.f32 2.0, %v1094_v28 }
 0x400   : > { %v1597_v33 = vpop.eup %1596  ;;  %1167 = vst [vmem:[%s1916_s9 + $0x38] sm:$0xff] %v1148_v49  ;;  %v1127_v34 = vmul.f32 %v1591_v5, %v1108_v29  ;;  %v1095_v36 = vmul.f32 %v1595_v30, %v1050_v54  ;;  %v1054_v37 = vpop.xlane.xlu0 %1053 }
 0x401   : > { %1164 = vst [vmem:[%s1916_s9 + $0x20] sm:$0xff] %v1145_v51  ;;  %v1132_v32 = vmul.f32 %v1593_v17, %v1113_v31  ;;  %v1092_v38 = vmul.f32 %v1597_v33, %v1044_v58  ;;  %1606 = vrcp.f32 %v1054_v37  ;;  %v1060_v40 = vpop.xlane.xlu1 %1059 }
 0x402   : > { %v1146_v57 = vmul.f32 %v1872_v63, %v1127_v34  ;;  %v1114_v41 = vsub.f32 2.0, %v1095_v36  ;;  %1608 = vrcp.f32 %v1060_v40 }
 0x403   : > { %v1599_v43 = vpop.eup %1598  ;;  %v1151_v59 = vmul.f32 %v1875_v6, %v1132_v32  ;;  %v1111_v44 = vsub.f32 2.0, %v1092_v38 }
 0x404   : > { %v1601_v45 = vpop.eup %1600  ;;  %1165 = vst [vmem:[%s1916_s9 + $0x28] sm:$0xff] %v1146_v57  ;;  %v1133_v46 = vmul.f32 %v1595_v30, %v1114_v41  ;;  %v1093_v47 = vmul.f32 %v1599_v43, %v1046_v7  ;;  %v1062_v48 = vpop.xlane.xlu0 %1061 }
 0x405   : > { %1170 = vst [vmem:[%s1916_s9 + $0x50] sm:$0xff] %v1151_v59  ;;  %v1130_v50 = vmul.f32 %v1597_v33, %v1111_v44  ;;  %v1098_v52 = vmul.f32 %v1601_v45, %v1056_v4  ;;  %1610 = vrcp.f32 %v1062_v48  ;;  %v1064_v53 = vpop.xlane.xlu1 %1063 }
 0x406   : > { %v1152_v63 = vmul.f32 %v1880_v13, %v1133_v46  ;;  %v1112_v54 = vsub.f32 2.0, %v1093_v47  ;;  %1612 = vrcp.f32 %v1064_v53 }
 0x407   : > { %v1603_v55 = vpop.eup %1602  ;;  %v1149_v6 = vmul.f32 %v1882_v14, %v1130_v50  ;;  %v1117_v56 = vsub.f32 2.0, %v1098_v52 }
 0x408   : > { %v1605_v58 = vpop.eup %1604  ;;  %1171 = vst [vmem:[%s1916_s9 + $0x58] sm:$0xff] %v1152_v63  ;;  %v1131_v60 = vmul.f32 %v1599_v43, %v1112_v54  ;;  %v1099_v61 = vmul.f32 %v1603_v55, %v1058_v26 }
 0x409   : > { %1168 = vst [vmem:[%s1916_s9 + $0x40] sm:$0xff] %v1149_v6  ;;  %v1136_v35 = vmul.f32 %v1601_v45, %v1117_v56  ;;  %v1096_v62 = vmul.f32 %v1605_v58, %v1052_v23 }
 0x40a   : > { %v1150_v0 = vmul.f32 %v1888_v19, %v1131_v60  ;;  %v1118_v1 = vsub.f32 2.0, %v1099_v61 }
 0x40b   : > { %v1607_v3 = vpop.eup %1606  ;;  %v1155_v13 = vmul.f32 %v1890_v8, %v1136_v35  ;;  %v1115_v2 = vsub.f32 2.0, %v1096_v62 }
 0x40c   : > { %v1609_v7 = vpop.eup %1608  ;;  %1169 = vst [vmem:[%s1916_s9 + $0x48] sm:$0xff] %v1150_v0  ;;  %v1137_v14 = vmul.f32 %v1603_v55, %v1118_v1  ;;  %v1097_v9 = vmul.f32 %v1607_v3, %v1054_v37 }
 0x40d   : > { %1174 = vst [vmem:[%s1916_s9 + $0x70] sm:$0xff] %v1155_v13  ;;  %v1134_v10 = vmul.f32 %v1605_v58, %v1115_v2  ;;  %v1100_v4 = vmul.f32 %v1609_v7, %v1060_v40 }
 0x40e   : > { %v1156_v39 = vmul.f32 %v1894_v11, %v1137_v14  ;;  %v1116_v15 = vsub.f32 2.0, %v1097_v9 }
 0x40f   : > { %v1611_v5 = vpop.eup %1610  ;;  %v1153_v19 = vmul.f32 %v1896_v21, %v1134_v10  ;;  %v1119_v42 = vsub.f32 2.0, %v1100_v4 }
 0x410   : > { %v1613_v16 = vpop.eup %1612  ;;  %1175 = vst [vmem:[%s1916_s9 + $0x78] sm:$0xff] %v1156_v39  ;;  %v1135_v8 = vmul.f32 %v1607_v3, %v1116_v15  ;;  %v1101_v17 = vmul.f32 %v1611_v5, %v1062_v48 }
 0x411   : > { %1172 = vst [vmem:[%s1916_s9 + $0x60] sm:$0xff] %v1153_v19  ;;  %v1138_v18 = vmul.f32 %v1609_v7, %v1119_v42  ;;  %v1102_v20 = vmul.f32 %v1613_v16, %v1064_v53 }
 0x412   : > { %v1154_v26 = vmul.f32 %v1900_v12, %v1135_v8  ;;  %v1120_v27 = vsub.f32 2.0, %v1101_v17 }
 0x413   : > { %v1157_v11 = vmul.f32 %v1902_v22, %v1138_v18  ;;  %v1121_v28 = vsub.f32 2.0, %v1102_v20 }
 0x414   : > { %1173 = vst [vmem:[%s1916_s9 + $0x68] sm:$0xff] %v1154_v26  ;;  %v1139_v23 = vmul.f32 %v1611_v5, %v1120_v27 }
 0x415   : > { %1176 = vst [vmem:[%s1916_s9 + $0x80] sm:$0xff] %v1157_v11  ;;  %v1140_v21 = vmul.f32 %v1613_v16, %v1121_v28 }
 0x416   : > { %v1158_v49 = vmul.f32 %v1906_v24, %v1139_v23 }
 0x417   : > { %v1159_v29 = vmul.f32 %v1908_v25, %v1140_v21 }
 0x418   : > { %1177 = vst [vmem:[%s1916_s9 + $0x88] sm:$0xff] %v1158_v49 }
 0x419   : > { %1178 = vst [vmem:[%s1916_s9 + $0x90] sm:$0xff] %v1159_v29 }
 0x41a PF: > { %s17_s24 = sadd.s32 1, %s1620_s24  }
 0x41b   : > { %p14_p4 = scmp.ge.s32.totalorder %s17_s24, 4  }
 0x41d   :  { %16 = sbr.rel (!%p14_p4) target bundleno = 1 (0x1), region = 78 }

</bundles_post_ra>
